<compile_context>
chip_gen: v7x
topology: tpu7x:2x2x1
jax: 0.10.0
libtpu: 0.0.40
codegen_flags: <defaults>
</compile_context>

<pallas_src>
import functools

import jax
import jax.numpy as jnp
from jax.experimental import pallas as pl
from jax.experimental.pallas import tpu as pltpu

KH = KW = 4
STRIDE = 2

# Conservative physical-VMEM assumption when the hardware can't be queried
# (v7x is the smallest generation at 64 MiB; v5e/v6e have 128 MiB).
_FALLBACK_VMEM_CAP = 64 * 1024 * 1024
_TM_HARD_CAP = 64 * 1024          # lanes; keeps a single tile DMA sane


def _round_up(a, b):
    return (a + b - 1) // b * b


def _tpu_vmem_capacity_bytes():
    """Physical VMEM of the local chip, with a safe fallback."""
    try:
        info = pltpu.get_tpu_info()
        cap = getattr(info, "vmem_capacity_bytes", None)
        if cap:
            return int(cap)
    except Exception:
        pass
    return _FALLBACK_VMEM_CAP


def _stem_matmul_kernel(w_ref, b_ref, patches_ref, out_ref):
    # w_ref: (OC, K)  b_ref: (OC, 1)  patches_ref: (K, TM)  out_ref: (OC, TM)
    acc = jnp.dot(w_ref[...], patches_ref[...],
                  preferred_element_type=jnp.float32)
    acc = acc + b_ref[...]                        # bias on the f32 accumulator
    out_ref[...] = jnp.maximum(acc, 0.0).astype(out_ref.dtype)


def _im2col_cm_km(x_cnhw, kh, kw, stride):
    """Extract conv patches from a channels-major (C, N, H, W) input.

    Returns (C*kh*kw, N*Ho*Wo).  The K axis is (C, kh, kw)-major — matching a
    PyTorch OIHW Conv2d weight flattened over its last three dims — and the M
    axis is (N, Ho, Wo)-major.  Because the (cheap, 1x-sized) transpose
    already happened on the input, no transpose of 4x-expanded data occurs.
    """
    C, N, H, W = x_cnhw.shape
    Ho = (H - kh) // stride + 1
    Wo = (W - kw) // stride + 1
    taps = []
    for i in range(kh):
        for j in range(kw):
            taps.append(x_cnhw[:, :, i:i + stride * Ho:stride,
                               j:j + stride * Wo:stride])      # (C, N, Ho, Wo)
    p = jnp.stack(taps, axis=1)                   # (C, kh*kw, N, Ho, Wo)
    return p.reshape(C * kh * kw, N * Ho * Wo), Ho, Wo


@functools.partial(jax.jit, static_argnames=("compute_dtype",))
def stem_forward(x_nchw, conv_weight, conv_bias, *,
                 compute_dtype=jnp.bfloat16):
    """Stem forward pass (Conv2d k=4 s=2 valid + ReLU).

    x_nchw:      (N, C, H, W)   float32
    conv_weight: (OC, C, 4, 4)  float32   (PyTorch Conv2d OIHW layout)
    conv_bias:   (OC,)          float32
    returns:     (N, OC, H_out, W_out) float32

    MXU operands are in `compute_dtype` (bf16 default); bias add and ReLU
    operate on the f32 accumulator, output is f32.
    """
    N, C, H, W = x_nchw.shape
    OC = conv_weight.shape[0]
    K = C * KH * KW
    itemsize = jnp.dtype(compute_dtype).itemsize

    # Cast the 1x input (not the 4x-expanded patches) and make it
    # channels-major before slicing: every im2col intermediate is already
    # narrow and K-major.
    x_cm = x_nchw.astype(compute_dtype).transpose(1, 0, 2, 3)   # (C, N, H, W)
    patches, Ho, Wo = _im2col_cm_km(x_cm, KH, KW, STRIDE)        # (K, M)
    M = patches.shape[1]

    # ---- Generation-aware tiling of the M (lane) axis ---------------------
    vmem_cap = _tpu_vmem_capacity_bytes()
    # Pipelined working set per lane: double-buffered patch tile + out tile.
    per_lane = 2 * K * itemsize + 2 * OC * 4
    budget = min(vmem_cap // 3, 40 * 1024 * 1024)     # leave Mosaic headroom
    tm_cap = max(512, min((budget // per_lane) // 128 * 128, _TM_HARD_CAP))

    # Balanced tiles: choose an even tile count >= 2 first, then size TM so
    # padding is bounded to <128 lanes per tile.
    grid_m = max(2, pl.cdiv(M, tm_cap))
    if grid_m % 2:
        grid_m += 1
    TM = _round_up(pl.cdiv(M, grid_m), 128)
    M_pad = grid_m * TM
    if M_pad != M:
        patches = jnp.pad(patches, ((0, 0), (0, M_pad - M)))

    # OIHW flattened over (C, kh, kw) matches the patches K ordering.
    w_mat = conv_weight.reshape(OC, K).astype(compute_dtype)     # (OC, K)
    b_mat = conv_bias.reshape(OC, 1).astype(jnp.float32)         # (OC, 1)

    working_set = per_lane * TM + 2 * (OC * K * itemsize + OC * 4)
    vmem_limit = int(min(vmem_cap * 3 // 4,
                         max(working_set + (8 << 20), 32 << 20)))

    cost = pl.CostEstimate(
        flops=2 * M_pad * K * OC,
        transcendentals=0,
        bytes_accessed=(K * M_pad + OC * K) * itemsize
                       + (OC * M_pad + OC) * 4,
    )

    out_t = pl.pallas_call(
        _stem_matmul_kernel,
        out_shape=jax.ShapeDtypeStruct((OC, M_pad), jnp.float32),
        grid=(grid_m,),
        in_specs=[
            pl.BlockSpec((OC, K), lambda i: (0, 0)),   # weight: VMEM-resident
            pl.BlockSpec((OC, 1), lambda i: (0, 0)),   # bias:   VMEM-resident
            pl.BlockSpec((K, TM), lambda i: (0, i)),   # patch tiles, pipelined
        ],
        out_specs=pl.BlockSpec((OC, TM), lambda i: (0, i)),  # lane-dense out
        compiler_params=pltpu.CompilerParams(
            dimension_semantics=("parallel",),
            vmem_limit_bytes=vmem_limit),
        cost_estimate=cost,
    )(w_mat, b_mat, patches)

    # (OC, M_pad) -> drop padding -> (OC, N, Ho, Wo) -> (N, OC, Ho, Wo)
    out_t = out_t[:, :M].reshape(OC, N, Ho, Wo)
    return out_t.transpose(1, 0, 2, 3)


def _reference_stem(x_nchw, conv_weight, conv_bias):
    """Pure-JAX reference (lax conv) for correctness check."""
    out = jax.lax.conv_general_dilated(
        x_nchw, conv_weight,
        window_strides=(STRIDE, STRIDE),
        padding="VALID",
        dimension_numbers=("NCHW", "OIHW", "NCHW"))
    out = out + conv_bias.reshape(1, -1, 1, 1)
    return jnp.maximum(out, 0.0)


if __name__ == "__main__":
    key = jax.random.PRNGKey(0)
    k_x, k_w, k_b = jax.random.split(key, 3)

    batch, in_channels, out_channels, spatial = 2, 3, 4, 16

    x = jax.random.normal(k_x, (batch, in_channels, spatial, spatial),
                          dtype=jnp.float32)
    # Deterministic synthetic parameters (Conv2d shapes: (OC, C, 4, 4), (OC,))
    conv_w = jax.random.normal(
        k_w, (out_channels, in_channels, KH, KW), dtype=jnp.float32) * 0.1
    conv_b = jax.random.normal(k_b, (out_channels,), dtype=jnp.float32) * 0.1

    ref = _reference_stem(x, conv_w, conv_b)

    # Default path: bf16 MXU operands, f32 accumulate (halves the dominant
    # HBM stream of this memory-bound kernel). Loose tolerance for bf16.
    out = stem_forward(x, conv_w, conv_b)
    jax.block_until_ready(out)
    assert out.shape == (batch, out_channels, 7, 7), out.shape
    assert jnp.allclose(out, ref, atol=3e-2, rtol=3e-2), \
        "bf16 mismatch vs reference"

    # f32 operand path: strict check against the lax.conv reference.
    out_f32 = stem_forward(x, conv_w, conv_b, compute_dtype=jnp.float32)
    jax.block_until_ready(out_f32)
    assert out_f32.shape == (batch, out_channels, 7, 7), out_f32.shape
    assert jnp.allclose(out_f32, ref, atol=1e-4, rtol=1e-4), \
        "f32 mismatch vs reference"

    print("KERNEL_OK")
</pallas_src>

<mosaic_0001>
module attributes {stable_mosaic.version = 11 : i64} {
  func.func @_stem_matmul_kernel(%arg0: i32, %arg1: memref<4x48xbf16, #tpu.memory_space<vmem>>, %arg2: memref<4x1xf32, #tpu.memory_space<vmem>>, %arg3: memref<48x128xbf16, #tpu.memory_space<vmem>>, %arg4: memref<4x128xf32, #tpu.memory_space<vmem>>) attributes {dimension_semantics = [#tpu.dimension_semantics<parallel>], iteration_bounds = array<i64: 2>, scalar_prefetch = 0 : i64, scratch_operands = 0 : i64, tpu.core_type = #tpu.core_type<tc>, window_params = [{pipeline_mode = #tpu.pipeline_mode<synchronous>, transform_indices = @transform_0, window_bounds = array<i64: 4, 48>}, {pipeline_mode = #tpu.pipeline_mode<synchronous>, transform_indices = @transform_1, window_bounds = array<i64: 4, 1>}, {transform_indices = @transform_2, window_bounds = array<i64: 48, 128>}, {transform_indices = @transform_3, window_bounds = array<i64: 4, 128>}]} {
    %c0 = arith.constant 0 : index
    %c0_0 = arith.constant 0 : index
    %0 = vector.load %arg1[%c0, %c0_0] : memref<4x48xbf16, #tpu.memory_space<vmem>>, vector<4x48xbf16>
    %c0_1 = arith.constant 0 : index
    %c0_2 = arith.constant 0 : index
    %1 = vector.load %arg3[%c0_1, %c0_2] : memref<48x128xbf16, #tpu.memory_space<vmem>>, vector<48x128xbf16>
    %cst = arith.constant dense<0.000000e+00> : vector<4x128xf32>
    %2 = tpu.matmul %0, %1, %cst {dimension_numbers = #tpu.dot_dimension_numbers<[1], [0], [0], [1], [0, 0, 1, 1], [], []>} : vector<4x48xbf16>, vector<48x128xbf16>, vector<4x128xf32> -> vector<4x128xf32>
    %c0_3 = arith.constant 0 : index
    %c0_4 = arith.constant 0 : index
    %3 = vector.load %arg2[%c0_3, %c0_4] : memref<4x1xf32, #tpu.memory_space<vmem>>, vector<4x1xf32>
    %4 = vector.broadcast %3 : vector<4x1xf32> to vector<4x128xf32>
    %5 = arith.addf %2, %4 : vector<4x128xf32>
    %cst_5 = arith.constant 0.000000e+00 : f32
    %6 = vector.broadcast %cst_5 : f32 to vector<4x128xf32>
    %7 = arith.maximumf %5, %6 : vector<4x128xf32>
    %c0_6 = arith.constant 0 : index
    %c0_7 = arith.constant 0 : index
    %8 = vector.load %arg4[%c0_6, %c0_7] : memref<4x128xf32, #tpu.memory_space<vmem>>, vector<4x128xf32>
    tpu.vector_store %arg4[%c0_6, %c0_7], %7 {strides = array<i32>} : memref<4x128xf32, #tpu.memory_space<vmem>>, vector<4x128xf32>,
    return
  }
  func.func @transform_0(%arg0: i32) -> (i32, i32) {
    %c0_i32 = arith.constant 0 : i32
    %c0_i32_0 = arith.constant 0 : i32
    %c0_i32_1 = arith.constant 0 : i32
    return %c0_i32, %c0_i32_0 : i32, i32
  }
  func.func @transform_1(%arg0: i32) -> (i32, i32) {
    %c0_i32 = arith.constant 0 : i32
    %c0_i32_0 = arith.constant 0 : i32
    %c0_i32_1 = arith.constant 0 : i32
    return %c0_i32, %c0_i32_0 : i32, i32
  }
  func.func @transform_2(%arg0: i32) -> (i32, i32) {
    %c0_i32 = arith.constant 0 : i32
    %c0_i32_0 = arith.constant 0 : i32
    return %c0_i32, %arg0 : i32, i32
  }
  func.func @transform_3(%arg0: i32) -> (i32, i32) {
    %c0_i32 = arith.constant 0 : i32
    %c0_i32_0 = arith.constant 0 : i32
    return %c0_i32, %arg0 : i32, i32
  }
}

</mosaic_0001>

<bundles_post_ra>
// kernel: stem_forward.1
= control target key start
LH: loop header
LB: loop body
LE: loop exit
PB: predicated region body
PF: predicated region fallthrough
CT: control target
= control target key end

     0   :  { %s474_s12 = smov 0   ;;  %s476_s13 = smov 0   ;;  %s534_s0 = inlined_call_operand.vmem [shape: bf16[4,48], index: 0, kind: input, shape index: {}]   ;;  %s535_s1 = inlined_call_operand.vmem [shape: f32[4,1], index: 1, kind: input, shape index: {}]   ;;  %s536_s2 = inlined_call_operand.vmem [shape: bf16[48,256], index: 2, kind: input, shape index: {}]   ;;  %s537_s3 = inlined_call_operand.vmem [shape: f32[4,256], index: 3, kind: output, shape index: {}]  }
   0x1   :  { %s478_s14 = smov 0  }
   0x2 LB: > { %s367_s15 = sadd.s32 4294967295, %s449_s14   ;;  %s491_s16 = sadd.s32 1, %s449_s14   ;;  %s449_s14 = sphi %s478_s14, %s540_s14   ;;  %s445_s13 = sphi %s476_s13, %s539_s13   ;;  %s441_s12 = sphi %s474_s12, %s538_s12  }
   0x3   : > { %s59_s17 = ssub.s32 %s449_s14, %s491_s16  ;;  %s62_s18 = sadd.s32 1, %s445_s13 }
   0x4   : > { %p60_p0 = scmp.eq.s32.totalorder %s59_s17, 0  ;;  %p69_p1 = scmp.ne.s32.totalorder %s445_s13, %s441_s12 }
   0x5   : > { %p70_p2 = scmp.eq.s32.totalorder %s449_s14, 0  ;;  %p370_p4 = scmp.ge.s32.totalorder %s449_s14, 2 }
   0x6   : > { %s500_s19 = scalar_select %p60_p0, %s445_s13, %s62_s18  }
   0x7   : > { %p71_p3 = por %p70_p2, %p69_p1  ;;  %127 = sbr.rel (%p370_p4) target bundleno = 22 (0x16), region = 24 }
   0xe   : > { %130 = sbr.rel (!%p71_p3) target bundleno = 22 (0x16), region = 28  ;;  %s132_s20 = sand.u32 (%p71_p3), 1, %s445_s13  }
   0xf   : > { %s371_s21 = sshll.u32 (%p71_p3), %s449_s14, 2  ;;  %s394_s22 = smul.u32 (%p71_p3), 24, %s132_s20 }
  0x10   : > { %s136_s25 = scalar_lea.vmem (%p71_p3), %s536_s2, %s371_s21 }
  0x11   : > { %v152_v0 = vld [vmem:[%s136_s25] sm:$0xf] (%p71_p3)  ;;  %v154_v1 = vld [vmem:[%s136_s25 + $0x8] sm:$0xf] (%p71_p3)  ;;  %v156_v2 = vld [vmem:[%s136_s25 + $0x10] sm:$0xf] (%p71_p3) }
  0x12   : > { %v158_v3 = vld [vmem:[%s136_s25 + $0x18] sm:$0xf] (%p71_p3)  ;;  %v160_v4 = vld [vmem:[%s136_s25 + $0x20] sm:$0xf] (%p71_p3)  ;;  %s134_s26 = scalar_lea.vmem (%p71_p3), [#allocation2], %s394_s22 }
  0x13   : > { %153 = vst [vmem:[%s134_s26] sm:$0xf] (%p71_p3), %v152_v0  ;;  %155 = vst [vmem:[%s134_s26 + $0x4] sm:$0xf] (%p71_p3), %v154_v1  ;;  %v162_v5 = vld [vmem:[%s136_s25 + $0x28] sm:$0xf] (%p71_p3) }
  0x14   : > { %157 = vst [vmem:[%s134_s26 + $0x8] sm:$0xf] (%p71_p3), %v156_v2  ;;  %159 = vst [vmem:[%s134_s26 + $0xc] sm:$0xf] (%p71_p3), %v158_v3 }
  0x15   : > { %161 = vst [vmem:[%s134_s26 + $0x10] sm:$0xf] %v160_v4  ;;  %163 = vst [vmem:[%s134_s26 + $0x14] sm:$0xf] %v162_v5 }
  0x16 PF: > { %p372_p5 = scmp.ge.s32.totalorder %s449_s14, 1  ;;  %p197_p6 = scmp.lt.s32.totalorder %s449_s14, 3 }
  0x18   : > { %p198_p7 = pnand %p372_p5, %p197_p6 }
  0x19   : > { %s204_s27 = sand.u32 (!%p198_p7), 1, %s441_s12   ;;  %v451_v6 = vmov (!%p198_p7), 0.0   ;;  %vm452_vm0 = vmmov (!%p198_p7), 0   ;;  %v238_v7 = vld [vmem:[%s535_s1] sm:$0xf] (!%p198_p7)  ;;  %v453_v8 = vmov (!%p198_p7), 0  }
  0x1a   : > { %201 = sbr.rel (%p198_p7) target bundleno = 259 (0x103), region = 69  ;;  %384 = vmatprep.subr.bf16.mxu0 (!%p198_p7), %v451_v6  ;;  %390 = vmatprep.mubr.msk.bf16.mxu0 (!%p198_p7), %vm452_vm0, %v451_v6  ;;  %v231_v12 = vld [vmem:[%s534_s0] sm:$0x3] (!%p198_p7)  ;;  %vm262_vm1 = vcmask (!%p198_p7), 392192   ;;  %p226_p8 = scmp.lt.s32.totalorder (!%p198_p7), %s367_s15, 1 }
  0x1b   : > { %s395_s28 = smul.u32 (!%p198_p7), 24, %s204_s27  ;;  %423 = vset.pattern.permute.xlu0 (!%p198_p7), %v453_v8 }
  0x1c   : > { %241 = vperm.xlu0 (!%p198_p7), %423, %v238_v7  }
  0x1d   : > { %s206_s4 = scalar_lea.vmem (!%p198_p7), [#allocation2], %s395_s28 }
  0x1e   : > { %v424_v9 = vld [vmem:[%s206_s4] sm:$0xff] (!%p198_p7)   ;;  %v425_v10 = vld [vmem:[%s206_s4 + $0x8] sm:$0xff] (!%p198_p7)   ;;  %v426_v11 = vld [vmem:[%s206_s4 + $0x10] sm:$0xff] (!%p198_p7)  }
  0x1f   : > { %385 = vmatpush3.bf16.msra.mxu0 (!%p198_p7), %v424_v9 }
  0x20   : > { %386 = vmatprep.subr.bf16.mxu0 (!%p198_p7), %v451_v6 }
  0x21   : > { %s542_s15 = smov (!%p226_p8, %s367_s15), 1 }
  0x22   : > { %s373_s7 = sshll.u32 %s542_s15, 2 }
  0x23   : > { %387 = vmatpush3.bf16.msra.mxu0 %v425_v10  ;;  %s229_s10 = scalar_lea.vmem %s537_s3, %s373_s7 }
  0x24   : > { %388 = vmatprep.subr.bf16.mxu0 %v451_v6 }
  0x27   : > { %389 = vmatpush3.bf16.msra.mxu0 %v426_v11 }
  0x2a   : > { %391 = vmatmul.mubr.msk.bf16.vlgmr.msra.gmra.mrb[0].mxu0 %vm262_vm1, %v231_v12 }
  0x9b   : > { %v242_v13 = vpop.permute.xlu0 %241 }
  0xfd   : > { %v300_v14 = vpop.f32.mrb[0].mxu0 }
  0xfe   : > { %v301_v15 = vadd.f32 %v300_v14, %v242_v13  ;;  %v392_v16 = vpop.f32.mrb[1].mxu0 }
  0xff   : > { %v303_v17 = vpop.f32.mrb[2].mxu0 }
 0x100   : > { %v306_v18 = vmax.f32 %v301_v15, 0.0  ;;  %v393_v19 = vpop.f32.mrb[3].mxu0 }
 0x102   : > { %307 = vst [vmem:[%s229_s10] sm:$0xf] %v306_v18 }
 0x103 PF: > { %p10_p9 = scmp.ge.s32.totalorder %s491_s16, 4   ;;  %s538_s12 = smov %s445_s13 }
 0x104   : > { %s539_s13 = smov %s500_s19  ;;  %s540_s14 = smov %s491_s16 }
 0x105   :  { %12 = sbr.rel (!%p10_p9) target bundleno = 2 (0x2), region = 108 }

</bundles_post_ra>
